<compile_context>
chip_gen: v5e
topology: v5e:2x2
jax: 0.10.0
libtpu: 0.0.40
codegen_flags: <defaults>
</compile_context>

<pallas_src>
import math

import jax
import jax.numpy as jnp
from jax.experimental import pallas as pl
from jax.experimental.pallas import tpu as pltpu

# LIF / module hyper-parameters (defaults of LIFNode / BaseNode).
THRESHOLD = 1.0
RESET = 0.0
TAU_M = 20.0
DECAY = math.exp(-1.0 / TAU_M)


def _round_up(x: int, m: int) -> int:
    return ((x + m - 1) // m) * m


def _pick_tile(dim: int, tile: int, align: int):
    """Pick a tile <= `tile` that splits `dim` evenly with < `align` padding.

    Returns (tile_size, padded_dim) with padded_dim % tile_size == 0.
    """
    num = -(-dim // tile)                  # number of tiles we want
    t = _round_up(-(-dim // num), align)   # even split, rounded to hw alignment
    return t, num * t


# ----------------------------- kernels --------------------------------------
# Grid = (M tiles, N tiles, K tiles); K is the innermost reduction axis.
# The f32 mem_out block is resident across K and doubles as the accumulator.

def _spiking_linear_kernel_mem(x_ref, w_ref, b_ref, mem_ref,
                               spike_ref, mem_out_ref):
    k = pl.program_id(2)

    @pl.when(k == 0)
    def _init():
        # Seed the resident accumulator with decay*mem + bias (broadcast [1,tn]).
        mem_out_ref[...] = mem_ref[...] * DECAY + b_ref[...].astype(jnp.float32)

    mem_out_ref[...] += jnp.dot(x_ref[...], w_ref[...],
                                preferred_element_type=jnp.float32)

    @pl.when(k == pl.num_programs(2) - 1)
    def _epilogue():
        mem = mem_out_ref[...]
        mask = mem > THRESHOLD                          # (mem - thr) > 0
        spike_ref[...] = mask.astype(spike_ref.dtype)   # Heaviside (0/1)
        mem_out_ref[...] = jnp.where(mask, RESET, mem)  # scalar reset, in place


def _spiking_linear_kernel_nomem(x_ref, w_ref, b_ref,
                                 spike_ref, mem_out_ref):
    k = pl.program_id(2)

    @pl.when(k == 0)
    def _init():
        mem_out_ref[...] = jnp.broadcast_to(
            b_ref[...].astype(jnp.float32), mem_out_ref.shape)

    mem_out_ref[...] += jnp.dot(x_ref[...], w_ref[...],
                                preferred_element_type=jnp.float32)

    @pl.when(k == pl.num_programs(2) - 1)
    def _epilogue():
        mem = mem_out_ref[...]
        mask = mem > THRESHOLD
        spike_ref[...] = mask.astype(spike_ref.dtype)
        mem_out_ref[...] = jnp.where(mask, RESET, mem)


# ----------------------------- wrappers --------------------------------------

def prepare_spiking_linear(w, b=None, *, tile_n: int = 1024, tile_k: int = 1024,
                           matmul_dtype=jnp.bfloat16):
    """Hoisted, call-once weight preparation.

    w: [K, N] (torch weight [out, in] transposed), b: [1, N] or None.
    Casts to the MXU input dtype and zero-pads once, so the per-step call
    does not re-read/re-write the K*N weight matrix in HBM.
    """
    K, N = w.shape
    tk, K_pad = _pick_tile(K, tile_k, 128)
    tn, N_pad = _pick_tile(N, tile_n, 128)

    wm = w.astype(matmul_dtype)
    if (K_pad, N_pad) != (K, N):
        wm = jnp.pad(wm, ((0, K_pad - K), (0, N_pad - N)))

    if b is None:
        bp = jnp.zeros((1, N_pad), jnp.float32)
    else:
        assert b.shape == (1, N)
        bp = b.astype(jnp.float32)
        if N_pad != N:
            bp = jnp.pad(bp, ((0, 0), (0, N_pad - N)))

    return dict(wm=wm, bp=bp, K=K, N=N, tk=tk, tn=tn, matmul_dtype=matmul_dtype)


def spiking_linear(x, params, mem=None, *, tile_m: int = 512,
                   spike_dtype=jnp.bfloat16):
    """x: [B, K]; params from prepare_spiking_linear; mem: [B, N] or None
    (None = fresh module state, i.e. zeros, via a faster no-mem-input path).
    Returns (spike [B, N], new_mem [B, N])."""
    B, K = x.shape
    assert K == params["K"], "x feature dim does not match prepared weights"
    N = params["N"]
    wm, bp = params["wm"], params["bp"]
    K_pad, N_pad = wm.shape
    tk, tn = params["tk"], params["tn"]
    matmul_dtype = params["matmul_dtype"]

    tm, B_pad = _pick_tile(B, tile_m, 8)

    # v7x has 2 TensorCores: make sure the parallel (M,N) part of the grid has
    # at least 2 tiles so both cores get work (harmless on 1-TC v5e/v6e).
    if (B_pad // tm) * (N_pad // tn) < 2:
        if tn % 256 == 0:
            tn //= 2
        elif tm % 16 == 0:
            tm //= 2

    # Per-call activation / state padding (weights were padded once in prepare).
    xm = x.astype(matmul_dtype)
    if (B_pad, K_pad) != (B, K):
        xm = jnp.pad(xm, ((0, B_pad - B), (0, K_pad - K)))

    has_mem = mem is not None
    if has_mem:
        assert mem.shape == (B, N)
        memp = mem.astype(jnp.float32)
        if (B_pad, N_pad) != (B, N):
            memp = jnp.pad(memp, ((0, B_pad - B), (0, N_pad - N)))

    # --- VMEM budget: double-buffered inputs + (resident, double-buffered) outs
    mm_b = jnp.dtype(matmul_dtype).itemsize
    sp_b = jnp.dtype(spike_dtype).itemsize
    est = (2 * (tm * tk * mm_b + tk * tn * mm_b + tn * 4)
           + (2 * tm * tn * 4 if has_mem else 0)
           + 2 * (tm * tn * sp_b + tm * tn * 4))
    try:
        phys = pltpu.get_tpu_info().vmem_capacity_bytes
    except Exception:
        phys = 64 * 1024 * 1024                      # v7x-safe fallback
    cap = (phys * 3) // 4                            # leave compiler headroom
    vmem_limit = int(min(max(est * 5 // 4, 32 * 1024 * 1024), cap))

    grid = (B_pad // tm, N_pad // tn, K_pad // tk)

    row_spec = pl.BlockSpec((tm, tn), lambda i, j, k: (i, j))
    in_specs = [
        pl.BlockSpec((tm, tk), lambda i, j, k: (i, k)),   # x    row/K tile
        pl.BlockSpec((tk, tn), lambda i, j, k: (k, j)),   # W    K/N tile
        pl.BlockSpec((1, tn), lambda i, j, k: (0, j)),    # bias N tile
    ]
    args = [xm, wm, bp]
    if has_mem:
        in_specs.append(row_spec)                          # mem  row/N tile
        args.append(memp)
        kernel = _spiking_linear_kernel_mem
    else:
        kernel = _spiking_linear_kernel_nomem

    spike, mem_new = pl.pallas_call(
        kernel,
        out_shape=(jax.ShapeDtypeStruct((B_pad, N_pad), spike_dtype),
                   jax.ShapeDtypeStruct((B_pad, N_pad), jnp.float32)),
        grid_spec=pltpu.PrefetchScalarGridSpec(
            num_scalar_prefetch=0,
            grid=grid,
            in_specs=in_specs,
            out_specs=[row_spec, row_spec],
        ),
        compiler_params=pltpu.CompilerParams(
            dimension_semantics=("parallel", "parallel", "arbitrary"),
            vmem_limit_bytes=vmem_limit),
    )(*args)

    return spike[:B, :N], mem_new[:B, :N]


# ----------------------------- reference & checks ----------------------------

def reference(x, w, b, mem):
    y = jnp.dot(x, w, preferred_element_type=jnp.float32) + b
    mem_pre = mem * DECAY + y
    spike = (mem_pre - THRESHOLD > 0.0).astype(jnp.float32)
    mem_new = jnp.where(spike > 0.0, RESET, mem_pre)
    return spike, mem_new, mem_pre


def check(spike, mem_new, spike_ref, mem_ref, mem_pre, *, margin, atol):
    spike = spike.astype(jnp.float32)
    # Spikes must be exactly 0 or 1.
    assert bool(jnp.all((spike == 0.0) | (spike == 1.0))), "spike not binary"
    # Ignore elements whose pre-reset membrane sits within `margin` of the
    # threshold (matmul rounding may legitimately flip those decisions).
    safe = jnp.abs(mem_pre - THRESHOLD) > margin
    assert bool(jnp.all(jnp.where(safe, spike == spike_ref, True))), "spike mismatch"
    assert bool(jnp.all(jnp.where(safe, jnp.abs(mem_new - mem_ref) <= atol, True))), \
        "mem mismatch"


if __name__ == "__main__":
    key = jax.random.PRNGKey(0)

    def make_case(k, B, IN, OUT):
        kx, kw, kb = jax.random.split(k, 3)
        bound = 1.0 / math.sqrt(IN)
        w_t = jax.random.uniform(kw, (OUT, IN), jnp.float32, -bound, bound)  # torch [out, in]
        w_ = jnp.transpose(w_t)                                              # kernel [in, out]
        b_ = jax.random.uniform(kb, (1, OUT), jnp.float32, -bound, bound)
        x_ = jax.random.normal(kx, (B, IN), jnp.float32)
        return x_, w_, b_

    k1, k2, k3, k4 = jax.random.split(key, 4)

    # Case 1: aligned shapes, exact f32 MXU path, explicit (zero) membrane state.
    x, w, b = make_case(k1, 8, 128, 128)
    mem0 = jnp.zeros((8, 128), jnp.float32)
    params = prepare_spiking_linear(w, b, matmul_dtype=jnp.float32)
    spike, mem_new = spiking_linear(x, params, mem0)
    jax.block_until_ready((spike, mem_new))
    s_ref, m_ref, m_pre = reference(x, w, b, mem0)
    assert spike.shape == (8, 128) and mem_new.shape == (8, 128)
    check(spike, mem_new, s_ref, m_ref, m_pre, margin=1e-3, atol=1e-4)

    # Case 2: ragged shapes, default bf16 MXU path, fresh-state fast path (mem=None).
    x, w, b = make_case(k2, 6, 100, 72)
    params = prepare_spiking_linear(w, b)              # bf16 default, prepared once
    spike, mem_new = spiking_linear(x, params, mem=None)
    jax.block_until_ready((spike, mem_new))
    s_ref, m_ref, m_pre = reference(x, w, b, jnp.zeros((6, 72), jnp.float32))
    assert spike.shape == (6, 72) and mem_new.shape == (6, 72)
    check(spike, mem_new, s_ref, m_ref, m_pre, margin=5e-2, atol=5e-2)

    # Case 3: ragged shapes, nonzero membrane state (exercises the decay path), f32.
    x, w, b = make_case(k3, 5, 96, 80)
    mem0 = 0.5 * jax.random.normal(k4, (5, 80), jnp.float32)
    params = prepare_spiking_linear(w, b, matmul_dtype=jnp.float32)
    spike, mem_new = spiking_linear(x, params, mem0)
    jax.block_until_ready((spike, mem_new))
    s_ref, m_ref, m_pre = reference(x, w, b, mem0)
    assert spike.shape == (5, 80) and mem_new.shape == (5, 80)
    check(spike, mem_new, s_ref, m_ref, m_pre, margin=1e-3, atol=1e-4)

    print("KERNEL_OK")
</pallas_src>

<mosaic_0001>
module attributes {stable_mosaic.version = 11 : i64} {
  func.func @_spiking_linear_kernel_mem(%arg0: i32, %arg1: i32, %arg2: i32, %arg3: memref<8x128xf32, #tpu.memory_space<vmem>>, %arg4: memref<128x128xf32, #tpu.memory_space<vmem>>, %arg5: memref<1x128xf32, #tpu.memory_space<vmem>>, %arg6: memref<8x128xf32, #tpu.memory_space<vmem>>, %arg7: memref<8x128xbf16, #tpu.memory_space<vmem>>, %arg8: memref<8x128xf32, #tpu.memory_space<vmem>>) attributes {dimension_semantics = [#tpu.dimension_semantics<parallel>, #tpu.dimension_semantics<parallel>, #tpu.dimension_semantics<arbitrary>], iteration_bounds = array<i64: 1, 1, 1>, scalar_prefetch = 0 : i64, scratch_operands = 0 : i64, tpu.core_type = #tpu.core_type<tc>, window_params = [{transform_indices = @transform_0, window_bounds = array<i64: 8, 128>}, {transform_indices = @transform_1, window_bounds = array<i64: 128, 128>}, {transform_indices = @transform_2, window_bounds = array<i64: 1, 128>}, {transform_indices = @transform_3, window_bounds = array<i64: 8, 128>}, {transform_indices = @transform_4, window_bounds = array<i64: 8, 128>}, {transform_indices = @transform_5, window_bounds = array<i64: 8, 128>}]} {
    %c0_i32 = arith.constant 0 : i32
    %0 = arith.cmpi eq, %arg2, %c0_i32 : i32
    %1 = arith.extui %0 : i1 to i32
    %c0_i32_0 = arith.constant 0 : i32
    %2 = arith.cmpi ne, %1, %c0_i32_0 : i32
    scf.if %2 {
      %c0_10 = arith.constant 0 : index
      %c0_11 = arith.constant 0 : index
      %12 = vector.load %arg6[%c0_10, %c0_11] : memref<8x128xf32, #tpu.memory_space<vmem>>, vector<8x128xf32>
      %cst_12 = arith.constant 0.951229453 : f32
      %13 = vector.broadcast %cst_12 : f32 to vector<8x128xf32>
      %14 = arith.mulf %12, %13 : vector<8x128xf32>
      %c0_13 = arith.constant 0 : index
      %c0_14 = arith.constant 0 : index
      %15 = vector.load %arg5[%c0_13, %c0_14] : memref<1x128xf32, #tpu.memory_space<vmem>>, vector<1x128xf32>
      %16 = vector.broadcast %15 : vector<1x128xf32> to vector<8x128xf32>
      %17 = arith.addf %14, %16 : vector<8x128xf32>
      %c0_15 = arith.constant 0 : index
      %c0_16 = arith.constant 0 : index
      %18 = vector.load %arg8[%c0_15, %c0_16] : memref<8x128xf32, #tpu.memory_space<vmem>>, vector<8x128xf32>
      tpu.vector_store %arg8[%c0_15, %c0_16], %17 {strides = array<i32>} : memref<8x128xf32, #tpu.memory_space<vmem>>, vector<8x128xf32>,
    } else {
    }
    %c0 = arith.constant 0 : index
    %c0_1 = arith.constant 0 : index
    %3 = vector.load %arg8[%c0, %c0_1] : memref<8x128xf32, #tpu.memory_space<vmem>>, vector<8x128xf32>
    %c0_2 = arith.constant 0 : index
    %c0_3 = arith.constant 0 : index
    %4 = vector.load %arg3[%c0_2, %c0_3] : memref<8x128xf32, #tpu.memory_space<vmem>>, vector<8x128xf32>
    %c0_4 = arith.constant 0 : index
    %c0_5 = arith.constant 0 : index
    %5 = vector.load %arg4[%c0_4, %c0_5] : memref<128x128xf32, #tpu.memory_space<vmem>>, vector<128x128xf32>
    %cst = arith.constant dense<0.000000e+00> : vector<8x128xf32>
    %6 = tpu.matmul %4, %5, %cst {dimension_numbers = #tpu.dot_dimension_numbers<[1], [0], [0], [1], [0, 0, 1, 1], [], []>} : vector<8x128xf32>, vector<128x128xf32>, vector<8x128xf32> -> vector<8x128xf32>
    %7 = arith.addf %3, %6 : vector<8x128xf32>
    %c0_6 = arith.constant 0 : index
    %c0_7 = arith.constant 0 : index
    %8 = vector.load %arg8[%c0_6, %c0_7] : memref<8x128xf32, #tpu.memory_space<vmem>>, vector<8x128xf32>
    tpu.vector_store %arg8[%c0_6, %c0_7], %7 {strides = array<i32>} : memref<8x128xf32, #tpu.memory_space<vmem>>, vector<8x128xf32>,
    %c0_i32_8 = arith.constant 0 : i32
    %9 = arith.cmpi eq, %arg2, %c0_i32_8 : i32
    %10 = arith.extui %9 : i1 to i32
    %c0_i32_9 = arith.constant 0 : i32
    %11 = arith.cmpi ne, %10, %c0_i32_9 : i32
    scf.if %11 {
      %c0_10 = arith.constant 0 : index
      %c0_11 = arith.constant 0 : index
      %12 = vector.load %arg8[%c0_10, %c0_11] : memref<8x128xf32, #tpu.memory_space<vmem>>, vector<8x128xf32>
      %cst_12 = arith.constant 1.000000e+00 : f32
      %13 = vector.broadcast %cst_12 : f32 to vector<8x128xf32>
      %14 = arith.cmpf ogt, %12, %13 : vector<8x128xf32>
      %15 = arith.extui %14 : vector<8x128xi1> to vector<8x128xi32>
      %16 = arith.sitofp %15 : vector<8x128xi32> to vector<8x128xf32>
      %17 = arith.truncf %16 : vector<8x128xf32> to vector<8x128xbf16>
      %c0_13 = arith.constant 0 : index
      %c0_14 = arith.constant 0 : index
      %18 = vector.load %arg7[%c0_13, %c0_14] : memref<8x128xbf16, #tpu.memory_space<vmem>>, vector<8x128xbf16>
      tpu.vector_store %arg7[%c0_13, %c0_14], %17 {strides = array<i32>} : memref<8x128xbf16, #tpu.memory_space<vmem>>, vector<8x128xbf16>,
      %cst_15 = arith.constant 0.000000e+00 : f32
      %19 = vector.broadcast %cst_15 : f32 to vector<8x128xf32>
      %20 = arith.select %14, %19, %12 : vector<8x128xi1>, vector<8x128xf32>
      %c0_16 = arith.constant 0 : index
      %c0_17 = arith.constant 0 : index
      %21 = vector.load %arg8[%c0_16, %c0_17] : memref<8x128xf32, #tpu.memory_space<vmem>>, vector<8x128xf32>
      tpu.vector_store %arg8[%c0_16, %c0_17], %20 {strides = array<i32>} : memref<8x128xf32, #tpu.memory_space<vmem>>, vector<8x128xf32>,
    } else {
    }
    return
  }
  func.func @transform_0(%arg0: i32, %arg1: i32, %arg2: i32) -> (i32, i32) {
    %c0_i32 = arith.constant 0 : i32
    return %arg0, %arg2 : i32, i32
  }
  func.func @transform_1(%arg0: i32, %arg1: i32, %arg2: i32) -> (i32, i32) {
    %c0_i32 = arith.constant 0 : i32
    return %arg2, %arg1 : i32, i32
  }
  func.func @transform_2(%arg0: i32, %arg1: i32, %arg2: i32) -> (i32, i32) {
    %c0_i32 = arith.constant 0 : i32
    %c0_i32_0 = arith.constant 0 : i32
    return %c0_i32, %arg1 : i32, i32
  }
  func.func @transform_3(%arg0: i32, %arg1: i32, %arg2: i32) -> (i32, i32) {
    %c0_i32 = arith.constant 0 : i32
    return %arg0, %arg1 : i32, i32
  }
  func.func @transform_4(%arg0: i32, %arg1: i32, %arg2: i32) -> (i32, i32) {
    %c0_i32 = arith.constant 0 : i32
    return %arg0, %arg1 : i32, i32
  }
  func.func @transform_5(%arg0: i32, %arg1: i32, %arg2: i32) -> (i32, i32) {
    %c0_i32 = arith.constant 0 : i32
    return %arg0, %arg1 : i32, i32
  }
}

</mosaic_0001>

<bundles_post_ra>
// kernel: tpu_custom_call.1
= control target key start
LH: loop header
LB: loop body
LE: loop exit
PB: predicated region body
PF: predicated region fallthrough
CT: control target
= control target key end

     0   :  { %11 = vsyncpa [#allocation3], 0  ;;  %s355_s0 = inlined_call_operand.hbm [shape: f32[8,128], index: 0, kind: input, shape index: {}]   ;;  %s356_s1 = inlined_call_operand.hbm [shape: f32[128,128], index: 1, kind: input, shape index: {}]   ;;  %s357_s2 = inlined_call_operand.vmem [shape: f32[1,128], index: 2, kind: input, shape index: {}]   ;;  %s358_s3 = inlined_call_operand.hbm [shape: f32[8,128], index: 3, kind: input, shape index: {}]   ;;  %s359_s4 = inlined_call_operand.hbm [shape: bf16[8,128], index: 4, kind: output, shape index: {0}]   ;;  %s360_s5 = inlined_call_operand.hbm [shape: f32[8,128], index: 5, kind: output, shape index: {1}]  }
   0x1   :  { %12 = vsyncpa [#allocation6], 0 }
   0x2   :  { %13 = vsyncpa [#allocation4], 0  ;;  %s30_s20 = sshll.u32 %s356_s1, 4  ;;  %s31_s20 = int_to_ptr.hbm [resolvable:$true] %s30_s20 }
   0x3   :  { %14 = vsyncpa [#allocation10], 0  ;;  %s299_s21 = smov [#allocation5]   ;;  %s20_s25 = sshll.u32 %s355_s0, 4  ;;  %s21_s25 = int_to_ptr.hbm [resolvable:$true] %s20_s25 }
   0x4   :  { %s32_s22 = sshll.u32 %s299_s21, 4  ;;  %s300_s26 = smov 128   ;;  %s33_s22 = int_to_ptr.vmem [resolvable:$true] %s32_s22 }
   0x5   :  { %s301_s27 = smov 8   ;;  %s302_s28 = smov [#allocation2]  }
   0x6   :  { %38 = dma.hbm_to_vmem [thread:$0]  %s31_s20, 2048, %s33_s22, [#allocation6], %s300_s26, %s300_s26, %s301_s27  }
   0x7   :  { %s22_s29 = sshll.u32 %s302_s28, 4  ;;  %s46_s7 = sshll.u32 %s358_s3, 4  ;;  %s23_s29 = int_to_ptr.vmem [resolvable:$true] %s22_s29  ;;  %s47_s7 = int_to_ptr.hbm [resolvable:$true] %s46_s7 }
   0x8   :  { %25 = dma.hbm_to_vmem [thread:$0]  %s21_s25, 128, %s23_s29, [#allocation3]  }
   0x9   :  { %s303_s1 = smov [#allocation7]  }
   0xa   :  { %s48_s8 = sshll.u32 %s303_s1, 4  ;;  %s49_s8 = int_to_ptr.vmem [resolvable:$true] %s48_s8 }
   0xb   :  { %51 = dma.hbm_to_vmem [thread:$0]  %s47_s7, 128, %s49_s8, [#allocation6]  }
   0xc   :  { %291 = dma.done.wait [#allocation3], 128  }
   0xd   :  { %292 = vsyncadd [#allocation3], 4294967168 }
   0xe   :  { %293 = dma.done.wait [#allocation6], 2176  }
   0xf   :  { %294 = vsyncadd [#allocation6], 4294965120  ;;  %v93_v0 = vld [vmem:[#allocation5 + $0x78] sm:$0xff]  ;;  %v92_v1 = vld [vmem:[#allocation5 + $0x70] sm:$0xff]  ;;  %s304_s9 = smov [#allocation9]   ;;  %s145_s13 = sshll.u32 %s360_s5, 4  ;;  %s146_s13 = int_to_ptr.hbm [resolvable:$true] %s145_s13 }
  0x10   :  { %94 = vmatpush.msra.mxu0 %v93_v0  ;;  %v91_v2 = vld [vmem:[#allocation5 + $0x68] sm:$0xff]  ;;  %v90_v3 = vld [vmem:[#allocation5 + $0x60] sm:$0xff]  ;;  %v89_v4 = vld [vmem:[#allocation5 + $0x58] sm:$0xff]  ;;  %s143_s10 = sshll.u32 %s304_s9, 4  ;;  %s305_s14 = smov [#allocation8]   ;;  %v306_v23 = vmov 0.0   ;;  %s144_s10 = int_to_ptr.vmem [resolvable:$true] %s143_s10 }
  0x11   :  { %v88_v5 = vld [vmem:[#allocation5 + $0x50] sm:$0xff]  ;;  %v87_v6 = vld [vmem:[#allocation5 + $0x48] sm:$0xff]  ;;  %v86_v7 = vld [vmem:[#allocation5 + $0x40] sm:$0xff]  ;;  %s132_s15 = sshll.u32 %s305_s14, 4  ;;  %s134_s18 = sshll.u32 %s359_s4, 4  ;;  %s133_s15 = int_to_ptr.vmem [resolvable:$true] %s132_s15  ;;  %s135_s18 = int_to_ptr.hbm [resolvable:$true] %s134_s18 }
  0x12   :  { %95 = vmatpush.msra.mxu0 %v92_v1  ;;  %v85_v8 = vld [vmem:[#allocation5 + $0x38] sm:$0xff]  ;;  %v84_v9 = vld [vmem:[#allocation5 + $0x30] sm:$0xff]  ;;  %v83_v10 = vld [vmem:[#allocation5 + $0x28] sm:$0xff] }
  0x13   :  { %v82_v11 = vld [vmem:[#allocation5 + $0x20] sm:$0xff]  ;;  %v81_v12 = vld [vmem:[#allocation5 + $0x18] sm:$0xff]  ;;  %v80_v13 = vld [vmem:[#allocation5 + $0x10] sm:$0xff] }
  0x14   :  { %96 = vmatpush.msra.mxu0 %v91_v2  ;;  %v79_v14 = vld [vmem:[#allocation5 + $0x8] sm:$0xff]  ;;  %v78_v15 = vld [vmem:[#allocation5] sm:$0xff]  ;;  %v77_v16 = vld [vmem:[#allocation2] sm:$0xff] }
  0x15   :  { %v68_v17 = vld [vmem:[#allocation7] sm:$0xff]  ;;  %v170_v19 = vld [vmem:[%s357_s2] ss:$0 sm:$0xff] }
  0x16   :  { %97 = vmatpush.msra.mxu0 %v90_v3  ;;  %v69_v18 = vmul.f32 0.95122945, %v68_v17 }
  0x18   :  { %98 = vmatpush.msra.mxu0 %v89_v4  ;;  %v74_v20 = vadd.f32 %v170_v19, %v69_v18 }
  0x1a   :  { %99 = vmatpush.msra.mxu0 %v88_v5 }
  0x1c   :  { %100 = vmatpush.msra.mxu0 %v87_v6 }
  0x1e   :  { %101 = vmatpush.msra.mxu0 %v86_v7 }
  0x20   :  { %102 = vmatpush.msra.mxu0 %v85_v8 }
  0x22   :  { %103 = vmatpush.msra.mxu0 %v84_v9 }
  0x24   :  { %104 = vmatpush.msra.mxu0 %v83_v10 }
  0x26   :  { %105 = vmatpush.msra.mxu0 %v82_v11 }
  0x28   :  { %106 = vmatpush.msra.mxu0 %v81_v12 }
  0x2a   :  { %107 = vmatpush.msra.mxu0 %v80_v13 }
  0x2c   :  { %108 = vmatpush.msra.mxu0 %v79_v14 }
  0x2e   :  { %109 = vmatpush.msra.mxu0 %v78_v15 }
  0x2f   :  { %110 = vmatmul.f32.vlgmr.msra.gmra.mxu0 %v77_v16 }
  0xac   :  { %v111_v21 = vpop.f32.mrf.mxu0 }
  0xad   :  { %v114_v22 = vadd.f32 %v111_v21, %v74_v20 }
  0xaf   :  { %vm120_vm0 = vcmp.gt.f32.partialorder %v114_v22, 1.0 }
  0xb0   :  { %v161_v24 = vsel %vm120_vm0, 1.0, %v306_v23  ;;  %v125_v25 = vsel %vm120_vm0, 0.0, %v114_v22 }
  0xb1   :  { %v123_v26 = vpack.c.bf16 %v161_v24, %v161_v24  ;;  %126 = vst [vmem:[#allocation9] sm:$0xff] %v125_v25 }
  0xb2   :  { %148 = dma.vmem_to_hbm [thread:$0]  %s144_s10, 128, %s146_s13, [#allocation10]  }
  0xb3   :  { %124 = vst [vmem:[#allocation8] sm:$0xf] %v123_v26 }
  0xb4   :  { %137 = dma.vmem_to_hbm [thread:$0]  %s133_s15, 64, %s135_s18, [#allocation4]  }
  0xb5   :  { %295 = dma.done.wait [#allocation4], 64  }
  0xb6   :  { %296 = vsyncadd [#allocation4], 4294967232 }
  0xb7   :  { %297 = dma.done.wait [#allocation10], 128  }
  0xb8   :  { %298 = vsyncadd [#allocation10], 4294967168 }
  0xb9   :  { %157 = vsyncpa [#allocation3], 1 }
  0xba   :  { %158 = vsyncpa [#allocation6], 1 }
  0xbb   :  { %159 = vsyncpa [#allocation4], 1 }
  0xbc   :  { %160 = vsyncpa [#allocation10], 1 }

</bundles_post_ra>
